<compile_context>
chip_gen: v7x
topology: tpu7x:2x2x1
jax: 0.10.0
libtpu: 0.0.40
codegen_flags: <defaults>
</compile_context>

<pallas_src>
import functools

import jax
import jax.numpy as jnp
from jax.experimental import pallas as pl
from jax.experimental.pallas import tpu as pltpu


def _mha_kernel(q_ref, k_ref, v_ref, mask_ref, wqkv_ref, bqkv_ref, wo_ref, bo_ref,
                out_ref, prob_ref=None, *, n_head, d_head):
    """One (batch, q-tile) step; all heads computed together.

    Shapes (TQ = q tile, S = kv length, H = n_head, Dh = d_head, D = d_hidn,
    HD = H*Dh):
      q_ref (1,TQ,D)   k_ref/v_ref (1,S,D)   mask_ref (1,TQ,S) int8
      wqkv_ref (3,D,HD)  bqkv_ref (3,1,HD)   wo_ref (HD,D)  bo_ref (1,D)
      out_ref (1,TQ,D)   prob_ref (1,H,TQ,S)
    """
    in_dt = q_ref.dtype

    q = q_ref[0]                       # (TQ, D)
    k = k_ref[0]                       # (S, D)
    v = v_ref[0]                       # (S, D)
    mask = mask_ref[0]                 # (TQ, S) int8, nonzero = masked

    tq = q.shape[0]
    s = k.shape[0]

    # Wide projections: one MXU call each with N = H*Dh columns.
    # 1/sqrt(d_head) is already folded into W_Q / b_Q by the wrapper.
    q_p = jnp.dot(q, wqkv_ref[0], preferred_element_type=jnp.float32) + bqkv_ref[0]
    k_p = jnp.dot(k, wqkv_ref[1], preferred_element_type=jnp.float32) + bqkv_ref[1]
    v_p = jnp.dot(v, wqkv_ref[2], preferred_element_type=jnp.float32) + bqkv_ref[2]

    # Head-major views for the batched per-head score / context matmuls.
    q_h = jnp.transpose(q_p.reshape(tq, n_head, d_head), (1, 0, 2)).astype(in_dt)
    k_h = jnp.transpose(k_p.reshape(s, n_head, d_head), (1, 0, 2)).astype(in_dt)
    v_h = jnp.transpose(v_p.reshape(s, n_head, d_head), (1, 0, 2)).astype(in_dt)

    scores = jnp.einsum("hqd,hkd->hqk", q_h, k_h,
                        preferred_element_type=jnp.float32)        # (H, TQ, S) f32
    scores = jnp.where(mask[None, :, :] != 0, jnp.float32(-1e9), scores)

    # Softmax in f32 (v5e has no bf16 VPU/EUP path).  Exact reciprocal: the
    # probabilities are returned to the caller, so rows must sum to 1.
    m = jnp.max(scores, axis=-1, keepdims=True)
    e = jnp.exp(scores - m)
    prob = e * pl.reciprocal(jnp.sum(e, axis=-1, keepdims=True))

    if prob_ref is not None:
        prob_ref[0] = prob.astype(prob_ref.dtype)

    ctx = jnp.einsum("hqk,hkd->hqd", prob.astype(in_dt), v_h,
                     preferred_element_type=jnp.float32)           # (H, TQ, Dh)

    # Concat over heads + output projection as a single wide matmul.
    ctx = jnp.transpose(ctx, (1, 0, 2)).reshape(tq, n_head * d_head).astype(in_dt)
    out = (jnp.dot(ctx, wo_ref[...], preferred_element_type=jnp.float32)
           + bo_ref[...].astype(jnp.float32))
    out_ref[0] = out.astype(out_ref.dtype)


def multi_head_attention(Q, K, V, attn_mask, params, *, n_head, d_head,
                         compute_dtype=None, prob_dtype=jnp.bfloat16,
                         return_prob=True, tq_max=256):
    """Pallas forward of the PyTorch MultiHeadAttention module (eval mode).

    compute_dtype: optional cast for activations/weights (bf16 recommended on
    v6e/v7x -- MXU full-rate and half the HBM traffic); softmax/accumulation
    stay in f32 regardless.  prob_dtype: dtype of the returned attn_prob
    (bf16 halves its HBM writeback).  return_prob=False skips the attn_prob
    output entirely.
    """
    B, S, d_hidn = Q.shape
    HD = n_head * d_head
    scale = 1.0 / float(d_head) ** 0.5

    cast = (lambda x: x.astype(compute_dtype)) if compute_dtype is not None else (lambda x: x)
    Q, K, V = cast(Q), cast(K), cast(V)

    # Q-tile size: full S for short sequences, else a bounded tile (multiple of 8).
    tq = S if S <= tq_max else tq_max
    assert S % tq == 0 and (tq == S or tq % 8 == 0), "seq len must tile evenly"
    n_tq = S // tq

    # Stack the three projection weights/biases into two resident tensors; fold
    # the 1/sqrt(d_head) scale into W_Q / b_Q (zero in-kernel cost).
    wqkv = cast(jnp.stack([params["wq"] * scale, params["wk"], params["wv"]], axis=0))
    bqkv = cast(jnp.stack([params["bq"] * scale, params["bk"], params["bv"]],
                          axis=0).reshape(3, 1, HD))
    wo = cast(params["wo"])
    bo = cast(params["bo"].reshape(1, d_hidn))

    mask_i8 = attn_mask.astype(jnp.int8)      # 4x less HBM read than int32

    in_specs = [
        pl.BlockSpec((1, tq, d_hidn), lambda b, qi: (b, qi, 0)),    # Q (q-tiled)
        pl.BlockSpec((1, S, d_hidn),  lambda b, qi: (b, 0, 0)),     # K (full)
        pl.BlockSpec((1, S, d_hidn),  lambda b, qi: (b, 0, 0)),     # V (full)
        pl.BlockSpec((1, tq, S),      lambda b, qi: (b, qi, 0)),    # mask int8
        pl.BlockSpec((3, d_hidn, HD), lambda b, qi: (0, 0, 0)),     # W_QKV (resident)
        pl.BlockSpec((3, 1, HD),      lambda b, qi: (0, 0, 0)),     # b_QKV
        pl.BlockSpec((HD, d_hidn),    lambda b, qi: (0, 0)),        # W_O
        pl.BlockSpec((1, d_hidn),     lambda b, qi: (0, 0)),        # b_O
    ]

    out_shapes = [jax.ShapeDtypeStruct((B, S, d_hidn), Q.dtype)]
    out_specs = [pl.BlockSpec((1, tq, d_hidn), lambda b, qi: (b, qi, 0))]
    if return_prob:
        out_shapes.append(jax.ShapeDtypeStruct((B, n_head, S, S), prob_dtype))
        out_specs.append(pl.BlockSpec((1, n_head, tq, S), lambda b, qi: (b, 0, qi, 0)))

    # Explicit VMEM budget from the per-step footprint (double-buffered blocks +
    # resident weights), capped at 56 MiB to leave headroom on v7x's 64 MiB.
    esize = jnp.dtype(Q.dtype).itemsize
    per_step = (tq * d_hidn + 2 * S * d_hidn) * esize           # Q/K/V blocks
    per_step += tq * S                                          # int8 mask
    per_step += tq * d_hidn * esize                             # out block
    if return_prob:
        per_step += n_head * tq * S * jnp.dtype(prob_dtype).itemsize
    weights = (3 * d_hidn * HD + 3 * HD + HD * d_hidn + d_hidn) * esize
    vmem_limit = int(min(max(4 * per_step + 2 * weights + (4 << 20), 16 << 20),
                         56 << 20))

    kernel = functools.partial(_mha_kernel, n_head=n_head, d_head=d_head)

    grid_spec = pltpu.PrefetchScalarGridSpec(
        num_scalar_prefetch=0,
        grid=(B, n_tq),
        in_specs=in_specs,
        out_specs=out_specs,
    )

    outs = pl.pallas_call(
        kernel,
        out_shape=tuple(out_shapes),
        grid_spec=grid_spec,
        compiler_params=pltpu.CompilerParams(
            dimension_semantics=("parallel", "parallel"),
            vmem_limit_bytes=vmem_limit),
    )(Q, K, V, mask_i8, wqkv, bqkv, wo, bo)

    if return_prob:
        return outs[0], outs[1]
    return outs[0], None


def ref_mha(Q, K, V, attn_mask, params, *, n_head, d_head):
    """Pure-JAX reference mirroring the PyTorch forward (eval mode, f32)."""
    B, S, d_hidn = Q.shape
    scale = 1.0 / float(d_head) ** 0.5

    def proj(x, w, b):
        return (x @ w + b).reshape(B, S, n_head, d_head).transpose(0, 2, 1, 3)

    q_s = proj(Q, params["wq"], params["bq"])
    k_s = proj(K, params["wk"], params["bk"])
    v_s = proj(V, params["wv"], params["bv"])

    scores = jnp.einsum("bhqd,bhkd->bhqk", q_s, k_s) * scale
    scores = jnp.where(attn_mask[:, None, :, :], -1e9, scores)
    prob = jax.nn.softmax(scores, axis=-1)
    ctx = jnp.einsum("bhqk,bhkd->bhqd", prob, v_s)
    ctx = ctx.transpose(0, 2, 1, 3).reshape(B, S, n_head * d_head)
    out = ctx @ params["wo"] + params["bo"]
    return out, prob


def init_params(key, d_hidn, n_head, d_head):
    """Deterministic nn.Linear-style init; weights stored as (in, out), bias (out,)."""
    HD = n_head * d_head
    ks = jax.random.split(key, 8)

    def lin(kw, kb, fan_in, fan_out):
        bound = 1.0 / float(fan_in) ** 0.5
        w = jax.random.uniform(kw, (fan_in, fan_out), jnp.float32, -bound, bound)
        b = jax.random.uniform(kb, (fan_out,), jnp.float32, -bound, bound)
        return w, b

    wq, bq = lin(ks[0], ks[1], d_hidn, HD)
    wk, bk = lin(ks[2], ks[3], d_hidn, HD)
    wv, bv = lin(ks[4], ks[5], d_hidn, HD)
    wo, bo = lin(ks[6], ks[7], HD, d_hidn)
    return dict(wq=wq, bq=bq, wk=wk, bk=bk, wv=wv, bv=bv, wo=wo, bo=bo)


if __name__ == "__main__":
    B, S, d_hidn, n_head, d_head = 2, 8, 32, 4, 8

    key = jax.random.PRNGKey(0)
    k_q, k_k, k_v, k_p = jax.random.split(key, 4)
    Q = jax.random.normal(k_q, (B, S, d_hidn), jnp.float32)
    K = jax.random.normal(k_k, (B, S, d_hidn), jnp.float32)
    V = jax.random.normal(k_v, (B, S, d_hidn), jnp.float32)
    # Causal mask: True = masked (future positions).
    attn_mask = jnp.broadcast_to(
        jnp.arange(S)[None, :] > jnp.arange(S)[:, None], (B, S, S))

    params = init_params(k_p, d_hidn, n_head, d_head)

    out_exp, prob_exp = ref_mha(Q, K, V, attn_mask, params,
                                n_head=n_head, d_head=d_head)

    # f32 activations (PyTorch-matching numerics; prob returned as bf16 by default).
    out, prob = multi_head_attention(Q, K, V, attn_mask, params,
                                     n_head=n_head, d_head=d_head)
    jax.block_until_ready(out)
    jax.block_until_ready(prob)
    assert out.shape == (B, S, d_hidn) and prob.shape == (B, n_head, S, S)
    assert jnp.allclose(out, out_exp, atol=1e-2, rtol=1e-2)
    assert jnp.allclose(prob.astype(jnp.float32), prob_exp, atol=1e-2, rtol=1e-2)

    # Callers that discard attn_prob skip its HBM writeback entirely.
    out_np, prob_np = multi_head_attention(Q, K, V, attn_mask, params,
                                           n_head=n_head, d_head=d_head,
                                           return_prob=False)
    jax.block_until_ready(out_np)
    assert prob_np is None
    assert jnp.allclose(out_np, out_exp, atol=1e-2, rtol=1e-2)

    # bf16 fast path (MXU peak-rate operands, f32 softmax/accumulation).
    out16, prob16 = multi_head_attention(Q, K, V, attn_mask, params,
                                         n_head=n_head, d_head=d_head,
                                         compute_dtype=jnp.bfloat16)
    jax.block_until_ready(out16)
    jax.block_until_ready(prob16)
    assert out16.shape == (B, S, d_hidn) and prob16.shape == (B, n_head, S, S)
    assert float(jnp.max(jnp.abs(out16.astype(jnp.float32) - out_exp))) < 0.25

    print("KERNEL_OK")
</pallas_src>

<mosaic_0001>
module attributes {stable_mosaic.version = 11 : i64} {
  func.func @_mha_kernel(%arg0: i32, %arg1: i32, %arg2: memref<1x8x32xf32, #tpu.memory_space<vmem>>, %arg3: memref<1x8x32xf32, #tpu.memory_space<vmem>>, %arg4: memref<1x8x32xf32, #tpu.memory_space<vmem>>, %arg5: memref<1x8x8xi8, #tpu.memory_space<vmem>>, %arg6: memref<3x32x32xf32, #tpu.memory_space<vmem>>, %arg7: memref<3x1x32xf32, #tpu.memory_space<vmem>>, %arg8: memref<32x32xf32, #tpu.memory_space<vmem>>, %arg9: memref<1x32xf32, #tpu.memory_space<vmem>>, %arg10: memref<1x8x32xf32, #tpu.memory_space<vmem>>, %arg11: memref<1x4x8x8xbf16, #tpu.memory_space<vmem>>) attributes {dimension_semantics = [#tpu.dimension_semantics<parallel>, #tpu.dimension_semantics<parallel>], iteration_bounds = array<i64: 2, 1>, scalar_prefetch = 0 : i64, scratch_operands = 0 : i64, tpu.core_type = #tpu.core_type<tc>, window_params = [{transform_indices = @transform_0, window_bounds = array<i64: 1, 8, 32>}, {transform_indices = @transform_1, window_bounds = array<i64: 1, 8, 32>}, {transform_indices = @transform_2, window_bounds = array<i64: 1, 8, 32>}, {transform_indices = @transform_3, window_bounds = array<i64: 1, 8, 8>}, {pipeline_mode = #tpu.pipeline_mode<synchronous>, transform_indices = @transform_4, window_bounds = array<i64: 3, 32, 32>}, {pipeline_mode = #tpu.pipeline_mode<synchronous>, transform_indices = @transform_5, window_bounds = array<i64: 3, 1, 32>}, {pipeline_mode = #tpu.pipeline_mode<synchronous>, transform_indices = @transform_6, window_bounds = array<i64: 32, 32>}, {pipeline_mode = #tpu.pipeline_mode<synchronous>, transform_indices = @transform_7, window_bounds = array<i64: 1, 32>}, {transform_indices = @transform_8, window_bounds = array<i64: 1, 8, 32>}, {transform_indices = @transform_9, window_bounds = array<i64: 1, 4, 8, 8>}]} {
    %c0 = arith.constant 0 : index
    %c0_0 = arith.constant 0 : index
    %c0_1 = arith.constant 0 : index
    %0 = vector.load %arg2[%c0, %c0_0, %c0_1] : memref<1x8x32xf32, #tpu.memory_space<vmem>>, vector<1x8x32xf32>
    %1 = vector.shape_cast %0 : vector<1x8x32xf32> to vector<8x32xf32>
    %c0_2 = arith.constant 0 : index
    %c0_3 = arith.constant 0 : index
    %c0_4 = arith.constant 0 : index
    %2 = vector.load %arg3[%c0_2, %c0_3, %c0_4] : memref<1x8x32xf32, #tpu.memory_space<vmem>>, vector<1x8x32xf32>
    %3 = vector.shape_cast %2 : vector<1x8x32xf32> to vector<8x32xf32>
    %c0_5 = arith.constant 0 : index
    %c0_6 = arith.constant 0 : index
    %c0_7 = arith.constant 0 : index
    %4 = vector.load %arg4[%c0_5, %c0_6, %c0_7] : memref<1x8x32xf32, #tpu.memory_space<vmem>>, vector<1x8x32xf32>
    %5 = vector.shape_cast %4 : vector<1x8x32xf32> to vector<8x32xf32>
    %c0_8 = arith.constant 0 : index
    %c0_9 = arith.constant 0 : index
    %c0_10 = arith.constant 0 : index
    %6 = vector.load %arg5[%c0_8, %c0_9, %c0_10] : memref<1x8x8xi8, #tpu.memory_space<vmem>>, vector<1x8x8xi8>
    %7 = vector.shape_cast %6 : vector<1x8x8xi8> to vector<8x8xi8>
    %c0_11 = arith.constant 0 : index
    %c0_12 = arith.constant 0 : index
    %c0_13 = arith.constant 0 : index
    %8 = vector.load %arg6[%c0_11, %c0_12, %c0_13] : memref<3x32x32xf32, #tpu.memory_space<vmem>>, vector<1x32x32xf32>
    %9 = vector.shape_cast %8 : vector<1x32x32xf32> to vector<32x32xf32>
    %cst = arith.constant dense<0.000000e+00> : vector<8x32xf32>
    %10 = tpu.matmul %1, %9, %cst {dimension_numbers = #tpu.dot_dimension_numbers<[1], [0], [0], [1], [0, 0, 1, 1], [], []>} : vector<8x32xf32>, vector<32x32xf32>, vector<8x32xf32> -> vector<8x32xf32>
    %c0_14 = arith.constant 0 : index
    %c0_15 = arith.constant 0 : index
    %c0_16 = arith.constant 0 : index
    %11 = vector.load %arg7[%c0_14, %c0_15, %c0_16] : memref<3x1x32xf32, #tpu.memory_space<vmem>>, vector<1x1x32xf32>
    %12 = vector.shape_cast %11 : vector<1x1x32xf32> to vector<1x32xf32>
    %13 = vector.broadcast %12 : vector<1x32xf32> to vector<8x32xf32>
    %14 = arith.addf %10, %13 : vector<8x32xf32>
    %c1 = arith.constant 1 : index
    %c0_17 = arith.constant 0 : index
    %c0_18 = arith.constant 0 : index
    %15 = vector.load %arg6[%c1, %c0_17, %c0_18] : memref<3x32x32xf32, #tpu.memory_space<vmem>>, vector<1x32x32xf32>
    %16 = vector.shape_cast %15 : vector<1x32x32xf32> to vector<32x32xf32>
    %cst_19 = arith.constant dense<0.000000e+00> : vector<8x32xf32>
    %17 = tpu.matmul %3, %16, %cst_19 {dimension_numbers = #tpu.dot_dimension_numbers<[1], [0], [0], [1], [0, 0, 1, 1], [], []>} : vector<8x32xf32>, vector<32x32xf32>, vector<8x32xf32> -> vector<8x32xf32>
    %c1_20 = arith.constant 1 : index
    %c0_21 = arith.constant 0 : index
    %c0_22 = arith.constant 0 : index
    %18 = vector.load %arg7[%c1_20, %c0_21, %c0_22] : memref<3x1x32xf32, #tpu.memory_space<vmem>>, vector<1x1x32xf32>
    %19 = vector.shape_cast %18 : vector<1x1x32xf32> to vector<1x32xf32>
    %20 = vector.broadcast %19 : vector<1x32xf32> to vector<8x32xf32>
    %21 = arith.addf %17, %20 : vector<8x32xf32>
    %c2 = arith.constant 2 : index
    %c0_23 = arith.constant 0 : index
    %c0_24 = arith.constant 0 : index
    %22 = vector.load %arg6[%c2, %c0_23, %c0_24] : memref<3x32x32xf32, #tpu.memory_space<vmem>>, vector<1x32x32xf32>
    %23 = vector.shape_cast %22 : vector<1x32x32xf32> to vector<32x32xf32>
    %cst_25 = arith.constant dense<0.000000e+00> : vector<8x32xf32>
    %24 = tpu.matmul %5, %23, %cst_25 {dimension_numbers = #tpu.dot_dimension_numbers<[1], [0], [0], [1], [0, 0, 1, 1], [], []>} : vector<8x32xf32>, vector<32x32xf32>, vector<8x32xf32> -> vector<8x32xf32>
    %c2_26 = arith.constant 2 : index
    %c0_27 = arith.constant 0 : index
    %c0_28 = arith.constant 0 : index
    %25 = vector.load %arg7[%c2_26, %c0_27, %c0_28] : memref<3x1x32xf32, #tpu.memory_space<vmem>>, vector<1x1x32xf32>
    %26 = vector.shape_cast %25 : vector<1x1x32xf32> to vector<1x32xf32>
    %27 = vector.broadcast %26 : vector<1x32xf32> to vector<8x32xf32>
    %28 = arith.addf %24, %27 : vector<8x32xf32>
    %29 = vector.shape_cast %14 : vector<8x32xf32> to vector<8x4x8xf32>
    %30 = tpu.transpose %29, [1, 0, 2] : vector<8x4x8xf32> -> vector<4x8x8xf32>
    %31 = vector.shape_cast %21 : vector<8x32xf32> to vector<8x4x8xf32>
    %32 = tpu.transpose %31, [1, 0, 2] : vector<8x4x8xf32> -> vector<4x8x8xf32>
    %33 = vector.shape_cast %28 : vector<8x32xf32> to vector<8x4x8xf32>
    %34 = tpu.transpose %33, [1, 0, 2] : vector<8x4x8xf32> -> vector<4x8x8xf32>
    "tpu.trace_start"() <{level = 10 : i32, message = "hqd,hkd->hqk"}> : () -> ()
    %cst_29 = arith.constant dense<0.000000e+00> : vector<4x8x8xf32>
    %35 = tpu.matmul %30, %32, %cst_29 {dimension_numbers = #tpu.dot_dimension_numbers<[2], [2], [1], [1], [0, 0, 0, 1, 1, 1], [0], [0]>} : vector<4x8x8xf32>, vector<4x8x8xf32>, vector<4x8x8xf32> -> vector<4x8x8xf32>
    "tpu.trace_stop"() : () -> ()
    %36 = vector.shape_cast %7 : vector<8x8xi8> to vector<1x8x8xi8>
    %c0_i8 = arith.constant 0 : i8
    %37 = vector.broadcast %c0_i8 : i8 to vector<1x8x8xi8>
    %38 = arith.cmpi ne, %36, %37 : vector<1x8x8xi8>
    %cst_30 = arith.constant -1.000000e+09 : f32
    %39 = vector.shape_cast %38 : vector<1x8x8xi1> to vector<1x8x8xi1>
    %40 = vector.broadcast %39 : vector<1x8x8xi1> to vector<4x8x8xi1>
    %41 = vector.broadcast %cst_30 : f32 to vector<4x8x8xf32>
    %42 = arith.select %40, %41, %35 : vector<4x8x8xi1>, vector<4x8x8xf32>
    %cst_31 = arith.constant dense<0xFF800000> : vector<4x8xf32>
    %43 = vector.multi_reduction <maximumf>, %42, %cst_31 [2] : vector<4x8x8xf32> to vector<4x8xf32>
    %44 = vector.shape_cast %43 : vector<4x8xf32> to vector<4x8x1xf32>
    %45 = vector.broadcast %44 : vector<4x8x1xf32> to vector<4x8x8xf32>
    %46 = arith.subf %42, %45 : vector<4x8x8xf32>
    %47 = math.exp %46 : vector<4x8x8xf32>
    %cst_32 = arith.constant dense<0.000000e+00> : vector<4x8xf32>
    %48 = vector.multi_reduction <add>, %47, %cst_32 [2] : vector<4x8x8xf32> to vector<4x8xf32>
    %49 = vector.shape_cast %48 : vector<4x8xf32> to vector<4x8x1xf32>
    %50 = tpu.reciprocal %49 : vector<4x8x1xf32> -> vector<4x8x1xf32>
    %51 = vector.broadcast %50 : vector<4x8x1xf32> to vector<4x8x8xf32>
    %52 = arith.mulf %47, %51 : vector<4x8x8xf32>
    %53 = arith.truncf %52 : vector<4x8x8xf32> to vector<4x8x8xbf16>
    %c0_33 = arith.constant 0 : index
    %c0_34 = arith.constant 0 : index
    %c0_35 = arith.constant 0 : index
    %c0_36 = arith.constant 0 : index
    %54 = vector.load %arg11[%c0_33, %c0_34, %c0_35, %c0_36] : memref<1x4x8x8xbf16, #tpu.memory_space<vmem>>, vector<1x4x8x8xbf16>
    %55 = vector.shape_cast %54 : vector<1x4x8x8xbf16> to vector<4x8x8xbf16>
    %56 = vector.shape_cast %53 : vector<4x8x8xbf16> to vector<1x4x8x8xbf16>
    tpu.vector_store %arg11[%c0_33, %c0_34, %c0_35, %c0_36], %56 {strides = array<i32>} : memref<1x4x8x8xbf16, #tpu.memory_space<vmem>>, vector<1x4x8x8xbf16>,
    "tpu.trace_start"() <{level = 10 : i32, message = "hqk,hkd->hqd"}> : () -> ()
    %cst_37 = arith.constant dense<0.000000e+00> : vector<4x8x8xf32>
    %57 = tpu.matmul %52, %34, %cst_37 {dimension_numbers = #tpu.dot_dimension_numbers<[2], [1], [1], [2], [0, 0, 0, 1, 1, 2], [0], [0]>} : vector<4x8x8xf32>, vector<4x8x8xf32>, vector<4x8x8xf32> -> vector<4x8x8xf32>
    "tpu.trace_stop"() : () -> ()
    %58 = tpu.transpose %57, [1, 0, 2] : vector<4x8x8xf32> -> vector<8x4x8xf32>
    %59 = vector.shape_cast %58 : vector<8x4x8xf32> to vector<8x32xf32>
    %c0_38 = arith.constant 0 : index
    %c0_39 = arith.constant 0 : index
    %60 = vector.load %arg8[%c0_38, %c0_39] : memref<32x32xf32, #tpu.memory_space<vmem>>, vector<32x32xf32>
    %cst_40 = arith.constant dense<0.000000e+00> : vector<8x32xf32>
    %61 = tpu.matmul %59, %60, %cst_40 {dimension_numbers = #tpu.dot_dimension_numbers<[1], [0], [0], [1], [0, 0, 1, 1], [], []>} : vector<8x32xf32>, vector<32x32xf32>, vector<8x32xf32> -> vector<8x32xf32>
    %c0_41 = arith.constant 0 : index
    %c0_42 = arith.constant 0 : index
    %62 = vector.load %arg9[%c0_41, %c0_42] : memref<1x32xf32, #tpu.memory_space<vmem>>, vector<1x32xf32>
    %63 = vector.broadcast %62 : vector<1x32xf32> to vector<8x32xf32>
    %64 = arith.addf %61, %63 : vector<8x32xf32>
    %c0_43 = arith.constant 0 : index
    %c0_44 = arith.constant 0 : index
    %c0_45 = arith.constant 0 : index
    %65 = vector.load %arg10[%c0_43, %c0_44, %c0_45] : memref<1x8x32xf32, #tpu.memory_space<vmem>>, vector<1x8x32xf32>
    %66 = vector.shape_cast %65 : vector<1x8x32xf32> to vector<8x32xf32>
    %67 = vector.shape_cast %64 : vector<8x32xf32> to vector<1x8x32xf32>
    tpu.vector_store %arg10[%c0_43, %c0_44, %c0_45], %67 {strides = array<i32>} : memref<1x8x32xf32, #tpu.memory_space<vmem>>, vector<1x8x32xf32>,
    return
  }
  func.func @transform_0(%arg0: i32, %arg1: i32) -> (i32, i32, i32) {
    %c0_i32 = arith.constant 0 : i32
    %c0_i32_0 = arith.constant 0 : i32
    return %arg0, %arg1, %c0_i32 : i32, i32, i32
  }
  func.func @transform_1(%arg0: i32, %arg1: i32) -> (i32, i32, i32) {
    %c0_i32 = arith.constant 0 : i32
    %c0_i32_0 = arith.constant 0 : i32
    %c0_i32_1 = arith.constant 0 : i32
    return %arg0, %c0_i32, %c0_i32_0 : i32, i32, i32
  }
  func.func @transform_2(%arg0: i32, %arg1: i32) -> (i32, i32, i32) {
    %c0_i32 = arith.constant 0 : i32
    %c0_i32_0 = arith.constant 0 : i32
    %c0_i32_1 = arith.constant 0 : i32
    return %arg0, %c0_i32, %c0_i32_0 : i32, i32, i32
  }
  func.func @transform_3(%arg0: i32, %arg1: i32) -> (i32, i32, i32) {
    %c0_i32 = arith.constant 0 : i32
    %c0_i32_0 = arith.constant 0 : i32
    return %arg0, %arg1, %c0_i32 : i32, i32, i32
  }
  func.func @transform_4(%arg0: i32, %arg1: i32) -> (i32, i32, i32) {
    %c0_i32 = arith.constant 0 : i32
    %c0_i32_0 = arith.constant 0 : i32
    %c0_i32_1 = arith.constant 0 : i32
    %c0_i32_2 = arith.constant 0 : i32
    return %c0_i32, %c0_i32_0, %c0_i32_1 : i32, i32, i32
  }
  func.func @transform_5(%arg0: i32, %arg1: i32) -> (i32, i32, i32) {
    %c0_i32 = arith.constant 0 : i32
    %c0_i32_0 = arith.constant 0 : i32
    %c0_i32_1 = arith.constant 0 : i32
    %c0_i32_2 = arith.constant 0 : i32
    return %c0_i32, %c0_i32_0, %c0_i32_1 : i32, i32, i32
  }
  func.func @transform_6(%arg0: i32, %arg1: i32) -> (i32, i32) {
    %c0_i32 = arith.constant 0 : i32
    %c0_i32_0 = arith.constant 0 : i32
    %c0_i32_1 = arith.constant 0 : i32
    return %c0_i32, %c0_i32_0 : i32, i32
  }
  func.func @transform_7(%arg0: i32, %arg1: i32) -> (i32, i32) {
    %c0_i32 = arith.constant 0 : i32
    %c0_i32_0 = arith.constant 0 : i32
    %c0_i32_1 = arith.constant 0 : i32
    return %c0_i32, %c0_i32_0 : i32, i32
  }
  func.func @transform_8(%arg0: i32, %arg1: i32) -> (i32, i32, i32) {
    %c0_i32 = arith.constant 0 : i32
    %c0_i32_0 = arith.constant 0 : i32
    return %arg0, %arg1, %c0_i32 : i32, i32, i32
  }
  func.func @transform_9(%arg0: i32, %arg1: i32) -> (i32, i32, i32, i32) {
    %c0_i32 = arith.constant 0 : i32
    %c0_i32_0 = arith.constant 0 : i32
    %c0_i32_1 = arith.constant 0 : i32
    return %arg0, %c0_i32, %arg1, %c0_i32_0 : i32, i32, i32, i32
  }
}

</mosaic_0001>

<bundles_post_ra>
// kernel: tpu_custom_call.1
= control target key start
LH: loop header
LB: loop body
LE: loop exit
PB: predicated region body
PF: predicated region fallthrough
CT: control target
= control target key end

     0   :  { %s3550_s0 = inlined_call_operand.hbm [shape: f32[2,8,32], index: 0, kind: input, shape index: {}]   ;;  %s3551_s1 = inlined_call_operand.hbm [shape: f32[2,8,32], index: 1, kind: input, shape index: {}]   ;;  %s3552_s2 = inlined_call_operand.hbm [shape: f32[2,8,32], index: 2, kind: input, shape index: {}]   ;;  %s3553_s3 = inlined_call_operand.vmem [shape: s8[2,8,8], index: 3, kind: input, shape index: {}]   ;;  %s3554_s4 = inlined_call_operand.hbm [shape: f32[3,32,32], index: 4, kind: input, shape index: {}]   ;;  %s3555_s5 = inlined_call_operand.vmem [shape: f32[3,1,32], index: 5, kind: input, shape index: {}]   ;;  %s3556_s6 = inlined_call_operand.hbm [shape: f32[32,32], index: 6, kind: input, shape index: {}]   ;;  %s3557_s7 = inlined_call_operand.vmem [shape: f32[1,32], index: 7, kind: input, shape index: {}]   ;;  %s3558_s8 = inlined_call_operand.hbm [shape: f32[2,8,32], index: 8, kind: output, shape index: {0}]   ;;  %s3559_s9 = inlined_call_operand.hbm [shape: bf16[2,4,8,8], index: 9, kind: output, shape index: {1}]  }
   0x1   :  { %3581 = sst [smem:[#allocation25_spill]] %s3551_s1 }
   0x2   :  { %3582 = sst [smem:[#allocation26_spill]] %s3554_s4 }
   0x3   :  { %3583 = sst [smem:[#allocation27_spill]] %s3556_s6 }
   0x4   :  { %3584 = sst [smem:[#allocation28_spill]] %s3558_s8 }
   0x5   :  { %15 = vsyncpa [#allocation3], 0 }
   0x6   :  { %17 = vsyncpa [#allocation3 + $0x1], 0 }
   0x7   :  { %18 = vsyncpa [#allocation6], 0 }
   0x8   :  { %20 = vsyncpa [#allocation6 + $0x1], 0 }
   0x9   :  { %21 = vsyncpa [#allocation9], 0 }
   0xa   :  { %22 = vsyncpa [#allocation4], 0 }
   0xb   :  { %24 = vsyncpa [#allocation4 + $0x1], 0 }
   0xc   :  { %25 = vsyncpa [#allocation13], 0 }
   0xd   :  { %27 = vsyncpa [#allocation13 + $0x1], 0  ;;  %s3009_s30 = smov 0   ;;  %s3011_s10 = smov 0  }
   0xe   :  { %s3013_s11 = smov 0   ;;  %s3015_s12 = smov 0  }
   0xf   :  { %s3017_s13 = smov 0   ;;  %s3019_s14 = smov 0  }
  0x10 LB: > { %3585 = sst [smem:[#allocation19_spill]] %s2914_s30  ;;  %s3040_s15 = sadd.s32 4294967295, %s2934_s14   ;;  %s2934_s14 = sphi %s3019_s14, %s33_s14   ;;  %s2930_s13 = sphi %s3017_s13, %s3626_s13   ;;  %s2926_s12 = sphi %s3015_s12, %s3625_s12   ;;  %s2922_s11 = sphi %s3013_s11, %s3629_s11   ;;  %s2918_s10 = sphi %s3011_s10, %s3628_s10   ;;  %s2914_s30 = sphi %s3009_s30, %s3627_s30  }
  0x11   : > { %3586 = sst [smem:[#allocation20_spill]] %s2930_s13  ;;  %s2334_s16 = sadd.s32 4294967294, %s2934_s14  }
  0x12   : > { %3587 = sst [smem:[#allocation21_spill]] %s2934_s14  ;;  %p67_p0 = scmp.ne.s32.totalorder %s2918_s10, %s2914_s30 }
  0x13   : > { %p3560_p1 = scmp.eq.s32.totalorder %s3040_s15, 0  ;;  %p263_p3 = scmp.eq.s32.totalorder %s2334_s16, 1 }
  0x14   : > { %p2335_p5 = scmp.ge.s32.totalorder %s2934_s14, 1  ;;  %p298_p7 = scmp.lt.s32.totalorder %s2934_s14, 3 }
  0x15   : > { %p3049_p4 = por %p3560_p1, %p67_p0  ;;  %p3054_p6 = por %p263_p3, %p67_p0 }
  0x16   : > { %p3059_p8 = pnand %p2335_p5, %p298_p7  ;;  %s2936_s20 = smov [#allocation8]  }
  0x17   : > { %s3588_s17 = scalar_select %p3049_p4, 1, 0 }
  0x18   : > { %s3589_s18 = scalar_select %p3054_p6, 1, 0 }
  0x19   : > { %s3591_s19 = scalar_select %p3059_p8, 1, 0 }
  0x1a   : > { %3590 = sst [smem:[#allocation22_spill]] %s3589_s18  ;;  %s310_s21 = sshll.u32 %s2936_s20, 4  ;;  %s311_s21 = int_to_ptr.vmem [resolvable:$true] %s310_s21 }
  0x1b   : > { %p2554_p9 = pneg %p3059_p8  ;;  %s45_s23 = sadd.s32 1, %s2930_s13 }
  0x1c   : > { %s3593_s4 = sld [smem:[#allocation26_spill]] }
  0x1d   : > { %p3068_p11 = pnand %p2554_p9, %p3560_p1 }
  0x1f   : > { %s3592_s22 = scalar_select %p3068_p11, 1, 0 }
  0x20   : > { %p3573_p13 = pneg %p3068_p11 }
  0x22   : > { %s2666_s26 = scalar_lea.hbm %s3593_s4, 1536 }
  0x23   : > { %p2667_p12 = scmp.ne.s32.totalorder %s3593_s4, %s2666_s26  ;;  %p2673_p5 = scmp.lt.u32.totalorder %s2666_s26, %s3593_s4 }
  0x25   : > { %p2669_p0 = pnand %p3573_p13, %p2667_p12 }
  0x27   : > { %p2670_p3 = pneg %p2669_p0 }
  0x29   : > { %p2675_p7 = pnand %p2673_p5, %p2670_p3 }
  0x2b   : > { %2678 = shalt.err (!%p2675_p7)
}
  0x2c   : > { %s2679_s20 = scalar_lea.vmem %s311_s21, 1536  ;;  %p2687_p2 = scmp.lt.s32.totalorder %s311_s21, %s311_s21 }
  0x2d   : > { %p2680_p9 = scmp.ne.s32.totalorder %s311_s21, %s2679_s20  ;;  %p2688_p6 = scmp.lt.s32.totalorder %s2679_s20, %s2679_s20 }
  0x2f   : > { %p2682_p10 = pnand %p2680_p9, %p3573_p13  ;;  %p2689_p4 = por %p2688_p6, %p2687_p2 }
  0x31   : > { %p2683_p1 = pneg %p2682_p10 }
  0x33   : > { %p2690_p8 = pnand %p2689_p4, %p2683_p1 }
  0x35   : > { %2693 = shalt.err (!%p2690_p8)
}
  0x36   : > { %s3563_s24 = smov 128   ;;  %s3564_s25 = smov 8  }
  0x37   : > { %2557 = dma.hbm_to_vmem [thread:$0]  (!%p3068_p11), %s3593_s4, 1536, %s311_s21, [#allocation9], %s3563_s24, %s3563_s24, %s3564_s25  }
  0x38   : > { %p47_p1 = scmp.ge.s32.totalorder %s45_s23, 2  ;;  %s54_s28 = sadd.s32 1, %s2922_s11 }
  0x39   : > { %p61_p2 = scmp.ne.s32.totalorder %s2922_s11, %s2918_s10  ;;  %p62_p4 = scmp.eq.s32.totalorder %s2934_s14, 0 }
  0x3a   : > { %s3631_s23 = smov (%p47_p1, %s45_s23), 0  ;;  %p3595_p8 = scmp.eq.s32.totalorder %s3040_s15, 1 }
  0x3b   : > { %3594 = sst [smem:[#allocation23_spill]] %s3631_s23  ;;  %p63_p6 = por %p62_p4, %p61_p2 }
  0x3c   : > { %p3106_p10 = por %p3595_p8, %p61_p2  ;;  %s49_s16 = ssub.s32 %s2930_s13, %s3631_s23 }
  0x3d   : > { %p2580_p12 = scmp.lt.s32.totalorder %s2934_s14, 2  ;;  %p52_p0 = scmp.eq.s32.totalorder %s49_s16, 0 }
  0x3e   : > { %s3596_s29 = scalar_select %p3106_p10, 1, 0 }
  0x3f   : > { %s3566_s20 = sand.u32 1, %s2922_s11   ;;  %s3119_s26 = sshll.u32 %s2930_s13, 7 }
  0x40   : > { %s3116_s21 = sshll.u32 %s3566_s20, 3  ;;  %p3124_p3 = pnand %p2580_p12, %p63_p6 }
  0x41   : > { %s3122_s27 = scalar_select %p52_p0, %s2922_s11, %s54_s28  }
  0x42   : > { %s3598_s24 = scalar_select %p3124_p3, 1, 0 }
  0x43   : > { %3597 = sst [smem:[#allocation24_spill]] %s3122_s27  ;;  %s362_s25 = sand.u32 1, %s2934_s14  }
  0x44   : > { %s3599_s1 = sld [smem:[#allocation25_spill]]  ;;  %s366_s20 = scalar_lea.vmem [#allocation5], %s3116_s21 }
  0x45   : > { %s373_s13 = sshll.u32 %s366_s20, 4  ;;  %s2939_s28 = smov [#allocation10]   ;;  %s3136_s13 = int_to_ptr.vmem [resolvable:$true] %s373_s13 }
  0x46   : > { %s3138_s27 = sshll.u32 %s2939_s28, 4  ;;  %s3140_s18 = scalar_lea.sflag [#allocation6], %s362_s25  ;;  %s327_s27 = int_to_ptr.vmem [resolvable:$true] %s3138_s27 }
  0x47   : > { %p3146_p7 = pneg %p3124_p3 }
  0x49   : > { %s3600_s4 = scalar_select %p3146_p7, 1, 0 }
  0x4a   : > { %s3133_s16 = scalar_lea.hbm %s3599_s1, %s3119_s26  ;;  %s2699_s14 = scalar_lea.hbm %s3599_s1, 256 }
  0x4b   : > { %s2694_s30 = scalar_lea.hbm %s3133_s16, 128  ;;  %p2700_p2 = scmp.lt.u32.totalorder %s3133_s16, %s3599_s1 }
  0x4c   : > { %p2695_p5 = scmp.ne.s32.totalorder %s3133_s16, %s2694_s30  ;;  %p2701_p4 = scmp.lt.u32.totalorder %s2699_s14, %s2694_s30 }
  0x4d   : > { %p2703_p8 = scmp.lt.u32.totalorder %s2694_s30, %s3133_s16 }
  0x4e   : > { %p2697_p9 = pnand %p3146_p7, %p2695_p5  ;;  %p2702_p6 = por %p2701_p4, %p2700_p2 }
  0x50   : > { %p2698_p1 = pneg %p2697_p9  ;;  %p2704_p12 = por %p2703_p8, %p2702_p6 }
  0x52   : > { %p2705_p0 = pnand %p2704_p12, %p2698_p1 }
  0x54   : > { %2708 = shalt.err (!%p2705_p0)
}
  0x55   : > { %s2709_s25 = scalar_lea.vmem %s3136_s13, 128  ;;  %s2940_s23 = smov [#allocation5]  }
  0x56   : > { %p2710_p5 = scmp.ne.s32.totalorder %s3136_s13, %s2709_s25  ;;  %s2714_s20 = sshll.u32 %s2940_s23, 4  ;;  %s2715_s20 = int_to_ptr.vmem [resolvable:$false] %s2714_s20 }
  0x57   : > { %s2716_s8 = scalar_lea.vmem %s2715_s20, 256  ;;  %p2717_p10 = scmp.lt.s32.totalorder %s3136_s13, %s2715_s20 }
  0x58   : > { %p2712_p9 = pnand %p2710_p5, %p3146_p7  ;;  %p2718_p11 = scmp.lt.s32.totalorder %s2716_s8, %s2709_s25 }
  0x5a   : > { %p2713_p13 = pneg %p2712_p9  ;;  %p2719_p2 = por %p2718_p11, %p2717_p10 }
  0x5c   : > { %p2720_p4 = pnand %p2719_p2, %p2713_p13 }
  0x5e   : > { %2723 = shalt.err (!%p2720_p4)
}
  0x5f   : > { %2567 = dma.hbm_to_vmem [thread:$0]  (!%p3124_p3), %s3133_s16, 128, %s3136_s13, %s3140_s18  }
  0x60   : > { %s3601_s6 = sld [smem:[#allocation27_spill]]  ;;  %p3602_p11 = scmp.ne.s32.totalorder %s3592_s22, 0 }
  0x62   : > { %p3603_p13 = pneg %p3602_p11 }
  0x66   : > { %s2724_s28 = scalar_lea.hbm %s3601_s6, 512 }
  0x67   : > { %p2725_p1 = scmp.ne.s32.totalorder %s3601_s6, %s2724_s28  ;;  %p2731_p8 = scmp.lt.u32.totalorder %s2724_s28, %s3601_s6 }
  0x69   : > { %p2727_p10 = pnand %p2725_p1, %p3603_p13 }
  0x6b   : > { %p2728_p6 = pneg %p2727_p10 }
  0x6d   : > { %p2733_p12 = pnand %p2731_p8, %p2728_p6 }
  0x6f   : > { %2736 = shalt.err (!%p2733_p12)
}
  0x70   : > { %s2737_s13 = scalar_lea.vmem %s327_s27, 512  ;;  %p3604_p5 = pmov %p3603_p13 }
  0x71   : > { %p2738_p0 = scmp.ne.s32.totalorder %s327_s27, %s2737_s13  ;;  %p2745_p4 = scmp.lt.s32.totalorder %s327_s27, %s327_s27 }
  0x72   : > { %p2746_p3 = scmp.lt.s32.totalorder %s2737_s13, %s2737_s13 }
  0x73   : > { %p2740_p9 = pnand %p2738_p0, %p3604_p5 }
  0x74   : > { %p2747_p7 = por %p2746_p3, %p2745_p4 }
  0x75   : > { %p2741_p2 = pneg %p2740_p9 }
  0x77   : > { %p2748_p1 = pnand %p2747_p7, %p2741_p2 }
  0x79   : > { %2751 = shalt.err (!%p2748_p1)
}
  0x7a   : > { %s3605_s1 = smov 8   ;;  %s3606_s16 = smov 128  }
  0x7b   : > { %2560 = dma.hbm_to_vmem [thread:$0]  (!%p3602_p11), %s3601_s6, 512, %s327_s27, [#allocation9], %s3606_s16, %s3606_s16, %s3605_s1  }
  0x7c   : > { %s3198_s23 = scalar_lea.hbm %s3550_s0, %s3119_s26  ;;  %s347_s22 = scalar_lea.vmem [#allocation2], %s3116_s21 }
  0x7d   : > { %s355_s25 = sshll.u32 %s347_s22, 4  ;;  %s3207_s8 = scalar_lea.hbm %s3552_s2, %s3119_s26  ;;  %s3201_s25 = int_to_ptr.vmem [resolvable:$true] %s355_s25 }
  0x7e   : > { %s3607_s30 = sand.u32 1, %s2922_s11   ;;  %s2752_s1 = scalar_lea.hbm %s3198_s23, 128 }
  0x7f   : > { %s344_s27 = scalar_lea.sflag [#allocation3], %s3607_s30  ;;  %p2753_p3 = scmp.ne.s32.totalorder %s3198_s23, %s2752_s1 }
  0x80   : > { %p3608_p7 = scmp.ne.s32.totalorder %s3600_s4, 0  ;;  %s2757_s28 = scalar_lea.hbm %s3550_s0, 256 }
  0x81   : > { %p2758_p10 = scmp.lt.u32.totalorder %s3198_s23, %s3550_s0  ;;  %p2759_p6 = scmp.lt.u32.totalorder %s2757_s28, %s2752_s1 }
  0x82   : > { %p2755_p11 = pnand %p2753_p3, %p3608_p7  ;;  %p2761_p12 = scmp.lt.u32.totalorder %s2752_s1, %s3198_s23 }
  0x83   : > { %p2760_p8 = por %p2759_p6, %p2758_p10 }
  0x84   : > { %p2756_p13 = pneg %p2755_p11 }
  0x85   : > { %p2762_p0 = por %p2761_p12, %p2760_p8 }
  0x87   : > { %p2763_p5 = pnand %p2762_p0, %p2756_p13 }
  0x89   : > { %2766 = shalt.err (!%p2763_p5)
}
  0x8a   : > { %s2767_s26 = scalar_lea.vmem %s3201_s25, 128  ;;  %s2941_s20 = smov [#allocation2]  }
  0x8b   : > { %p2768_p9 = scmp.ne.s32.totalorder %s3201_s25, %s2767_s26  ;;  %s2772_s13 = sshll.u32 %s2941_s20, 4  ;;  %s2773_s13 = int_to_ptr.vmem [resolvable:$false] %s2772_s13 }
  0x8c   : > { %s2774_s6 = scalar_lea.vmem %s2773_s13, 256  ;;  %p2775_p1 = scmp.lt.s32.totalorder %s3201_s25, %s2773_s13 }
  0x8d   : > { %p2770_p2 = pnand %p2768_p9, %p3608_p7  ;;  %p2776_p3 = scmp.lt.s32.totalorder %s2774_s6, %s2767_s26 }
  0x8f   : > { %p2771_p4 = pneg %p2770_p2  ;;  %p2777_p11 = por %p2776_p3, %p2775_p1 }
  0x91   : > { %p2778_p10 = pnand %p2777_p11, %p2771_p4 }
  0x93   : > { %2781 = shalt.err (!%p2778_p10)
}
  0x94   : > { %p3609_p13 = scmp.ne.s32.totalorder %s3598_s24, 0  ;;  %s384_s30 = scalar_lea.vmem [#allocation7], %s3116_s21 }
  0x95   : > { %s391_s1 = sshll.u32 %s384_s30, 4  ;;  %s2782_s16 = scalar_lea.hbm %s3207_s8, 128  ;;  %s392_s1 = int_to_ptr.vmem [resolvable:$true] %s391_s1 }
  0x96   : > { %2564 = dma.hbm_to_vmem [thread:$0]  (!%p3609_p13), %s3198_s23, 128, %s3201_s25, %s344_s27  }
  0x97   : > { %p2783_p6 = scmp.ne.s32.totalorder %s3207_s8, %s2782_s16  ;;  %s2787_s22 = scalar_lea.hbm %s3552_s2, 256 }
  0x98   : > { %p2788_p0 = scmp.lt.u32.totalorder %s3207_s8, %s3552_s2  ;;  %p2789_p5 = scmp.lt.u32.totalorder %s2787_s22, %s2782_s16 }
  0x99   : > { %p2785_p8 = pnand %p2783_p6, %p3608_p7  ;;  %p2791_p2 = scmp.lt.u32.totalorder %s2782_s16, %s3207_s8 }
  0x9a   : > { %p2790_p9 = por %p2789_p5, %p2788_p0 }
  0x9b   : > { %p2786_p12 = pneg %p2785_p8 }
  0x9c   : > { %p2792_p4 = por %p2791_p2, %p2790_p9 }
  0x9e   : > { %p2793_p1 = pnand %p2792_p4, %p2786_p12 }
  0xa0   : > { %2796 = shalt.err (!%p2793_p1)
}
  0xa1   : > { %s2797_s21 = scalar_lea.vmem %s392_s1, 128  ;;  %s2942_s23 = smov [#allocation7]  }
  0xa2   : > { %p2798_p3 = scmp.ne.s32.totalorder %s392_s1, %s2797_s21  ;;  %s2802_s25 = sshll.u32 %s2942_s23, 4  ;;  %s2803_s25 = int_to_ptr.vmem [resolvable:$false] %s2802_s25 }
  0xa3   : > { %s2804_s27 = scalar_lea.vmem %s2803_s25, 256  ;;  %p2805_p6 = scmp.lt.s32.totalorder %s392_s1, %s2803_s25 }
  0xa4   : > { %p2800_p11 = pnand %p2798_p3, %p3608_p7  ;;  %p2806_p8 = scmp.lt.s32.totalorder %s2804_s27, %s2797_s21 }
  0xa6   : > { %p2801_p10 = pneg %p2800_p11  ;;  %p2807_p13 = por %p2806_p8, %p2805_p6 }
  0xa8   : > { %p2808_p0 = pnand %p2807_p13, %p2801_p10 }
  0xaa   : > { %2811 = shalt.err (!%p2808_p0)
}
  0xab   : > { %p3610_p5 = scmp.ne.s32.totalorder %s3598_s24, 0  ;;  %p3611_p12 = scmp.ne.s32.totalorder %s3591_s19, 0 }
  0xac   : > { %s3254_s4 = sand.u32 (!%p3611_p12), 1, %s2918_s10   ;;  %p3612_p7 = scmp.ne.s32.totalorder (!%p3611_p12), %s3588_s17, 0 }
  0xad   : > { %2570 = dma.hbm_to_vmem [thread:$0]  (!%p3610_p5), %s3207_s8, 128, %s392_s1, %s3140_s18  }
  0xae   : > { %410 = sbr.rel (%p3611_p12) target bundleno = 1685 (0x695), region = 52  ;;  %s3257_s13 = sshll.u32 (!%p3611_p12), %s3254_s4, 3 }
  0xaf   : > { %s413_s6 = scalar_lea.sflag (!%p3611_p12), [#allocation3], %s3254_s4  ;;  %s416_s30 = scalar_lea.vmem (!%p3611_p12), [#allocation2], %s3257_s13 }
  0xb5   : > { %2893 = dma.done.wait (%p3612_p7), %s413_s6, 128  }
  0xb6   : > { %2895 = vsyncadd (%p3612_p7), %s413_s6, 4294967168  ;;  %s421_s18 = sand.u32 1, %s3040_s15   ;;  %s425_s24 = scalar_lea.vmem [#allocation5], %s3257_s13 }
  0xb7   : > { %s422_s19 = scalar_lea.sflag [#allocation6], %s421_s18 }
  0xb8   : > { %2897 = dma.done.wait (%p3612_p7), %s422_s19, 256  }
  0xb9   : > { %2899 = vsyncadd (%p3612_p7), %s422_s19, 4294967040  ;;  %s434_s8 = scalar_lea.vmem [#allocation7], %s3257_s13  ;;  %p3613_p13 = scmp.eq.s32.totalorder %s3040_s15, 0 }
  0xbb   : > { %2901 = dma.done.wait (%p3613_p13), [#allocation9], 2048   ;;  %p3614_p9 = pmov %p3613_p13 }
  0xbc   : > { %v2943_v0 = vmov 0.0|0.0   ;;  %vm2944_vm0 = vmmov 0   ;;  %v2945_v1 = vmov 0.0   ;;  %v598_v2 = vld [vmem:[#allocation8 + $0x20] sm:$0xff]  ;;  %v599_v3 = vld [vmem:[#allocation8 + $0x28] sm:$0xff]  ;;  %v600_v7 = vld [vmem:[#allocation8 + $0x30] sm:$0xff]  ;;  %v784_v33 = vlaneseq }
  0xbd   : > { %2903 = vsyncadd (%p3614_p9), [#allocation9], 4294965248  ;;  %2518 = vmatprep.subr.bf16.mxu1 %v2943_v0  ;;  %2512 = vmatprep.subr.bf16.mxu0 %v2943_v0  ;;  %v512_v4 = vld [vmem:[#allocation8] sm:$0xff]  ;;  %v2519_v5 = vpack.c.bf16 %v599_v3, %v598_v2  ;;  %v513_v6 = vld [vmem:[#allocation8 + $0x8] sm:$0xff]  ;;  %vm523_vm1 = vcmask 261120   ;;  %s2946_s14 = smov 104  }
  0xbe   : > { %2447 = vmatprep.mubr.msk.f32.mxu1 %vm2944_vm0, %v2945_v1  ;;  %2436 = vmatprep.mubr.msk.f32.mxu0 %vm2944_vm0, %v2945_v1  ;;  %v601_v8 = vld [vmem:[#allocation8 + $0x38] sm:$0xff]  ;;  %v2513_v9 = vpack.c.bf16 %v513_v6, %v512_v4  ;;  %v514_v10 = vld [vmem:[#allocation8 + $0x10] sm:$0xff]  ;;  %v509_v14 = vld [vmem:[%s425_s24] sm:$0xff]  ;;  %s2947_s28 = smov 120   ;;  %s2948_s22 = smov 112   ;;  %v785_v37 = vshrl.u32 %v784_v33, 7 }
  0xbf   : > { %v515_v11 = vld [vmem:[#allocation8 + $0x18] sm:$0xff]  ;;  %2520 = vmatpush3.bf16.msra.mxu1 %v2519_v5  ;;  %v2522_v12 = vpack.c.bf16 %v601_v8, %v600_v7  ;;  %v2357_v16 = vld [vmem:[%s3555_s5 + $0x1] ss:$0 sm:$0xff]  ;;  %v2354_v18 = vld [vmem:[%s3555_s5] ss:$0 sm:$0xff]  ;;  %vm1207_vm2 = vcmask 64512  }
  0xc0   : > { %2514 = vmatpush3.bf16.msra.mxu0 %v2513_v9  ;;  %2521 = vmatprep.subr.bf16.mxu1 %v2943_v0  ;;  %v2516_v13 = vpack.c.bf16 %v515_v11, %v514_v10  ;;  %v508_v15 = vld [vmem:[%s416_s30] sm:$0xff]  ;;  %v684_v24 = vld [vmem:[#allocation8 + $0x40] sm:$0xff]  ;;  %v685_v25 = vld [vmem:[#allocation8 + $0x48] sm:$0xff]  ;;  %v2949_v31 = vmov 1983009808   ;;  %p499_p2 = scmp.lt.s32.totalorder %s2926_s12, 1 }
  0xc1   : > { %2515 = vmatprep.subr.bf16.mxu0 %v2943_v0  ;;  %v686_v26 = vld [vmem:[#allocation8 + $0x50] sm:$0xff]  ;;  %v2525_v27 = vpack.c.bf16 %v685_v25, %v684_v24  ;;  %v687_v28 = vld [vmem:[#allocation8 + $0x58] sm:$0xff]  ;;  %v782_v32 = vunpack.c.l.s4 %v2949_v31  ;;  %v2950_v34 = vmov 1934713408   ;;  %s2352_s30 = sshll.u32 %s3254_s4, 4  ;;  %vm1570_vm5 = vcmask 60416  }
  0xc2   : > { %v2528_v29 = vpack.c.bf16 %v687_v28, %v686_v26  ;;  %v510_v30 = vld [vmem:[%s434_s8] sm:$0xff]  ;;  %v814_v35 = vunpack.c.l.s4 %v2950_v34  ;;  %s500_s26 = scalar_select %p499_p2, %s2926_s12, 1  ;;  %vm2016_vm6 = vcmask 130048   ;;  %vm2018_vm7 = vcmask 195584  }
  0xc3   : > { %2523 = vmatpush3.bf16.msra.mxu1 %v2522_v12  ;;  %v783_v36 = vunpack.c.0.s8 %v782_v32  ;;  %s3401_s18 = scalar_lea.vmem [#allocation12], %s2352_s30  ;;  %s2952_s19 = smov 16  }
  0xc4   : > { %2517 = vmatpush3.bf16.msra.mxu0 %v2516_v13  ;;  %2461 = vmatprep.subr.mxu1 %v2945_v1  ;;  %v815_v40 = vunpack.c.0.s8 %v814_v35  ;;  %s2353_s20 = sshll.u32 %s500_s26, 1  ;;  %s2953_s24 = smov 8  }
  0xc5   : > { %2524 = vmatprep.subr.bf16.mxu0 %v2943_v0  ;;  %v3313_v41 = vsub.s32 %v783_v36, %v785_v37  ;;  %s505_s25 = scalar_lea.vmem %s3553_s3, %s2353_s20  ;;  %s2954_s8 = smov 24  }
  0xc6   : > { %2448 = vmatmul.mubr.msk.f32.vlgmr.msra.gmra.mrb[0].mxu1 %vm523_vm1, %v509_v14  ;;  %v3315_v48 = vsub.s32 %v815_v40, %v785_v37  ;;  %s2391_s15 = sshll.u32 %s2926_s12, 8  ;;  %s2139_s17 = sshll.u32 %s3401_s18, 4  ;;  %s3466_s17 = int_to_ptr.vmem [resolvable:$true] %s2139_s17 }
  0xc7   : > { %2437 = vmatmul.mubr.msk.f32.vlgmr.msra.gmra.mrb[0].mxu0 %vm523_vm1, %v508_v15  ;;  %2463 = vmatprep.mubr.msk.f32.mxu1 %vm2944_vm0, %v2945_v1  ;;  %p3617_p1 = scmp.ne.s32.totalorder %s3596_s29, 0  ;;  %s2955_s26 = smov [#allocation12]  }
  0xc8   : > { %2458 = vmatprep.mubr.msk.f32.mxu0 %vm2944_vm0, %v2945_v1  ;;  %2526 = vmatpush3.bf16.msra.mxu0 %v2525_v27  ;;  %s2816_s20 = sshll.u32 %s2955_s26, 4  ;;  %s2817_s20 = int_to_ptr.vmem [resolvable:$false] %s2816_s20 }
  0xc9   : > { %2527 = vmatprep.subr.bf16.mxu0 %v2943_v0  ;;  %s2818_s21 = scalar_lea.vmem %s2817_s20, 512  ;;  %p2819_p10 = scmp.lt.s32.totalorder %s3466_s17, %s2817_s20 }
  0xcc   : > { %2529 = vmatpush3.bf16.msra.mxu0 %v2528_v29 }
  0xcd   : > { %2481 = vmatprep.subr.mxu0 %v2945_v1 }
  0xcf   : > { %2459 = vmatmul.mubr.msk.f32.vlgmr.msra.gmra.mrb[2].mxu0 %vm523_vm1, %v510_v30 }
  0xd0   : > { %2483 = vmatprep.mubr.msk.f32.mxu0 %vm2944_vm0, %v2945_v1 }
 0x199   : > { %v679_v17 = vpop.f32.mrb[0].mxu1 }
 0x19a   : > { %v680_v19 = vadd.f32 %v2357_v16, %v679_v17  ;;  %v2449_v20 = vpop.f32.mrb[1].mxu1  ;;  %v593_v21 = vpop.f32.mrb[0].mxu0 }
 0x19b   : > { %v2438_v22 = vpop.f32.mrb[1].mxu0  ;;  %v594_v23 = vadd.f32 %v2354_v18, %v593_v21 }
 0x19c   : > { %922 = vrot.lane.b32.xlu1 %v680_v19, %s2946_s14  ;;  %916 = vrot.lane.b32.xlu0 %v680_v19, %s2947_s28 }
 0x1a0   : > { %919 = vrot.lane.b32.xlu0 %v680_v19, %s2948_s22  ;;  %770 = vrot.lane.b32.xlu1 %v594_v23, %s2947_s28 }
 0x1a4   : > { %773 = vrot.lane.b32.xlu0 %v594_v23, %s2948_s22  ;;  %776 = vrot.lane.b32.xlu1 %v594_v23, %s2946_s14 }
 0x20e   : > { %v923_v38 = vpop.permute.xlu1 %922  ;;  %v917_v39 = vpop.permute.xlu0 %916 }
 0x20f   : > { %v941_v42 = vcombine.low %v917_v39, %v923_v38  ;;  %v942_v43 = vcombine.high %v917_v39, %v923_v38 }
 0x211   : > { %v949_v49 = vrot.slane %v941_v42, %v3313_v41  ;;  %v956_v50 = vrot.slane %v942_v43, %v3313_v41 }
 0x212   : > { %v920_v44 = vpop.permute.xlu0 %919  ;;  %v771_v45 = vpop.permute.xlu1 %770 }
 0x213   : > { %v925_v46 = vcombine.low %v680_v19, %v920_v44  ;;  %v926_v47 = vcombine.high %v680_v19, %v920_v44 }
 0x215   : > { %v933_v51 = vrot.slane %v925_v46, %v3313_v41  ;;  %v940_v52 = vrot.slane %v926_v47, %v3313_v41 }
 0x216   : > { %v774_v53 = vpop.permute.xlu0 %773  ;;  %v777_v54 = vpop.permute.xlu1 %776 }
 0x217   : > { %v957_v55 = vcombine.low %v933_v51, %v949_v49  ;;  %v958_v56 = vcombine.high %v933_v51, %v949_v49  ;;  %v973_v57 = vcombine.low %v940_v52, %v956_v50  ;;  %v974_v58 = vcombine.high %v940_v52, %v956_v50 }
 0x218   : > { %v779_v59 = vcombine.low %v594_v23, %v774_v53  ;;  %v780_v60 = vcombine.high %v594_v23, %v774_v53  ;;  %v795_v61 = vcombine.low %v771_v45, %v777_v54  ;;  %v796_v62 = vcombine.high %v771_v45, %v777_v54 }
 0x219   : > { %v965_v63 = vrot.slane %v957_v55, %v3315_v48  ;;  %v972_v2 = vrot.slane %v958_v56, %v3315_v48  ;;  %v981_v3 = vrot.slane %v973_v57, %v3315_v48  ;;  %v988_v4 = vrot.slane %v974_v58, %v3315_v48 }
 0x21a   : > { %v787_v5 = vrot.slane %v779_v59, %v3313_v41  ;;  %v794_v6 = vrot.slane %v780_v60, %v3313_v41  ;;  %v803_v7 = vrot.slane %v795_v61, %v3313_v41  ;;  %v810_v8 = vrot.slane %v796_v62, %v3313_v41  ;;  %v765_v59 = vpop.f32.mrb[2].mxu0  ;;  %v511_v61 = vld [vmem:[%s505_s25] sm:$0x3] }
 0x21b   : > { %v993_v9 = vcombine.low %v965_v63, %v972_v2  ;;  %v2364_v10 = vcombine.high %v965_v63, %v972_v2  ;;  %v1009_v11 = vcombine.low %v981_v3, %v988_v4  ;;  %v2365_v12 = vcombine.high %v981_v3, %v988_v4  ;;  %v2460_v60 = vpop.f32.mrb[3].mxu0 }
 0x21c   : > { %v811_v13 = vcombine.low %v787_v5, %v803_v7  ;;  %v812_v14 = vcombine.high %v787_v5, %v803_v7  ;;  %v827_v15 = vcombine.low %v794_v6, %v810_v8  ;;  %v828_v16 = vcombine.high %v794_v6, %v810_v8 }
 0x21d   : > { %v1000_v17 = vrot.slane %v993_v9, %v3313_v41  ;;  %v1008_v18 = vrot.slane %v2364_v10, %v3313_v41  ;;  %v1016_v19 = vrot.slane %v1009_v11, %v3313_v41  ;;  %v1024_v20 = vrot.slane %v2365_v12, %v3313_v41 }
 0x21e   : > { %v819_v21 = vrot.slane %v811_v13, %v3315_v48  ;;  %v826_v22 = vrot.slane %v812_v14, %v3315_v48  ;;  %v835_v23 = vrot.slane %v827_v15, %v3315_v48  ;;  %v842_v24 = vrot.slane %v828_v16, %v3315_v48 }
 0x21f   : > { %v1025_v25 = vcombine.low %v1000_v17, %v1008_v18  ;;  %v1041_v26 = vcombine.low %v1016_v19, %v1024_v20  ;;  %v1026_v40 = vcombine.high %v1000_v17, %v1008_v18  ;;  %v1042_v42 = vcombine.high %v1016_v19, %v1024_v20  ;;  %v2360_v20 = vld [vmem:[%s3555_s5 + $0x2] ss:$0 sm:$0xff] }
 0x220   : > { %v847_v27 = vcombine.low %v819_v21, %v826_v22  ;;  %v2362_v28 = vcombine.high %v819_v21, %v826_v22  ;;  %v863_v29 = vcombine.low %v835_v23, %v842_v24  ;;  %v2363_v30 = vcombine.high %v835_v23, %v842_v24 }
 0x221   : > { %v1033_v31 = vrot.slane %v1025_v25, %v3315_v48  ;;  %v1049_v32 = vrot.slane %v1041_v26, %v3315_v48  ;;  %v1040_v50 = vrot.slane %v1026_v40, %v3315_v48  ;;  %v1056_v51 = vrot.slane %v1042_v42, %v3315_v48 }
 0x222   : > { %v854_v33 = vrot.slane %v847_v27, %v3313_v41  ;;  %v862_v34 = vrot.slane %v2362_v28, %v3313_v41  ;;  %v870_v35 = vrot.slane %v863_v29, %v3313_v41  ;;  %v878_v36 = vrot.slane %v2363_v30, %v3313_v41 }
 0x223   : > { %v1057_v37 = vcombine.low %v1033_v31, %v1049_v32  ;;  %v1058_v49 = vcombine.high %v1033_v31, %v1049_v32  ;;  %v1059_v55 = vcombine.low %v1040_v50, %v1056_v51  ;;  %v1060_v57 = vcombine.high %v1040_v50, %v1056_v51 }
 0x224   : > { %v879_v38 = vcombine.low %v854_v33, %v862_v34  ;;  %v895_v39 = vcombine.low %v870_v35, %v878_v36  ;;  %v880_v45 = vcombine.high %v854_v33, %v862_v34  ;;  %v896_v46 = vcombine.high %v870_v35, %v878_v36 }
 0x225   : > { %2462 = vmatpush3.xpose.msk.msra.mxu1 %vm1207_vm2, %v1057_v37  ;;  %vm1512_vm3 = vnez %v511_v61  ;;  %v2951_v62 = vmov 0   ;;  %v766_v21 = vadd.f32 %v2360_v20, %v765_v59 }
 0x226   : > { %2466 = vmatprep.subr.mxu1 %v2945_v1  ;;  %v887_v43 = vrot.slane %v879_v38, %v3315_v48  ;;  %v903_v44 = vrot.slane %v895_v39, %v3315_v48  ;;  %v894_v53 = vrot.slane %v880_v45, %v3315_v48  ;;  %v910_v54 = vrot.slane %v896_v46, %v3315_v48 }
 0x227   : > { %v1513_v63 = vsel %vm1512_vm3, 16843009, %v2951_v62 }
 0x228   : > { %v911_v47 = vcombine.low %v887_v43, %v903_v44  ;;  %v912_v52 = vcombine.high %v887_v43, %v903_v44  ;;  %v913_v56 = vcombine.low %v894_v53, %v910_v54  ;;  %v914_v58 = vcombine.high %v894_v53, %v910_v54 }
 0x229   : > { %v1514_v2 = vunpack.c.0.s8 %v1513_v63 }
 0x22a   : > { %2464 = vmatmul.mubr.msk.f32.vlgmr.msra.gmra.mrb[2].mxu1 %vm1207_vm2, %v911_v47 }
 0x22b   : > { %2467 = vmatpush3.xpose.msk.msra.mxu1 %vm1207_vm2, %v1058_v49  ;;  %2468 = vmatprep.mubr.msk.f32.mxu1 %vm2944_vm0, %v2945_v1  ;;  %vm3374_vm4 = vcmp.ne.s32.totalorder %v1514_v2, 0 }
 0x22c   : > { %2471 = vmatprep.subr.mxu1 %v2945_v1 }
 0x22e   : > { %2469 = vmatmul.mubr.msk.f32.vlgmr.msra.gmra.mrb[4].mxu1 %vm1207_vm2, %v912_v52 }
 0x22f   : > { %2472 = vmatpush3.xpose.msk.msra.mxu1 %vm1207_vm2, %v1059_v55  ;;  %2473 = vmatprep.mubr.msk.f32.mxu1 %vm2944_vm0, %v2945_v1 }
 0x230   : > { %2476 = vmatprep.subr.mxu1 %v2945_v1 }
 0x232   : > { %2474 = vmatmul.mubr.msk.f32.vlgmr.msra.gmra.mrb[6].mxu1 %vm1207_vm2, %v913_v56 }
 0x233   : > { %2477 = vmatpush3.xpose.msk.msra.mxu1 %vm1207_vm2, %v1060_v57  ;;  %2478 = vmatprep.mubr.msk.f32.mxu1 %vm2944_vm0, %v2945_v1 }
 0x234   : > { %2486 = vmatprep.subr.mxu1 %v2945_v1 }
 0x236   : > { %2479 = vmatmul.mubr.msk.f32.vlgmr.msra.gmra.mrb[8].mxu1 %vm1207_vm2, %v914_v58 }
 0x237   : > { %2488 = vmatprep.mubr.msk.f32.mxu1 %vm2944_vm0, %v2945_v1 }
 0x2fd   : > { %v1280_v4 = vpop.f32.mrb[2].mxu1 }
 0x2fe   : > { %v1518_v5 = vsel %vm3374_vm4, -1e+09, %v1280_v4  ;;  %v2465_v6 = vpop.f32.mrb[3].mxu1 }
 0x2ff   : > { %v1522_v7 = vsel %vm1207_vm2, %v1518_v5, -inf }
 0x300   : > { %1523 = vmax.xlane.f32.xlu0 %v1522_v7 }
 0x301   : > { %v1356_v8 = vpop.f32.mrb[4].mxu1 }
 0x302   : > { %v1519_v9 = vsel %vm3374_vm4, -1e+09, %v1356_v8  ;;  %v2470_v10 = vpop.f32.mrb[5].mxu1 }
 0x303   : > { %v1525_v11 = vsel %vm1207_vm2, %v1519_v9, -inf }
 0x304   : > { %1526 = vmax.xlane.f32.xlu1 %v1525_v11 }
 0x305   : > { %v1432_v12 = vpop.f32.mrb[6].mxu1 }
 0x306   : > { %v1520_v13 = vsel %vm3374_vm4, -1e+09, %v1432_v12  ;;  %v2475_v14 = vpop.f32.mrb[7].mxu1 }
 0x307   : > { %v1528_v15 = vsel %vm1207_vm2, %v1520_v13, -inf }
 0x308   : > { %1529 = vmax.xlane.f32.xlu0 %v1528_v15 }
 0x309   : > { %v1508_v16 = vpop.f32.mrb[8].mxu1 }
 0x30a   : > { %v1521_v17 = vsel %vm3374_vm4, -1e+09, %v1508_v16  ;;  %v2480_v18 = vpop.f32.mrb[9].mxu1 }
 0x30b   : > { %v1531_v19 = vsel %vm1207_vm2, %v1521_v17, -inf }
 0x30c   : > { %1532 = vmax.xlane.f32.xlu0 %v1531_v19 }
 0x315   : > { %1062 = vrot.lane.b32.xlu1 %v766_v21, %s2947_s28  ;;  %s2111_s28 = scalar_lea.sflag [#allocation13], %s3254_s4 }
 0x38d   : > { %v1524_v22 = vpop.xlane.xlu0 %1523 }
 0x38e   : > { %v1534_v23 = vsub.f32 %v1518_v5, %v1524_v22 }
 0x390   : > { %v1538_v24 = vmul.f32 1.442695, %v1534_v23 }
 0x391   : > { %v1527_v25 = vpop.xlane.xlu1 %1526 }
 0x392   : > { %2650 = vpow2.f32 %v1538_v24  ;;  %v1535_v26 = vsub.f32 %v1519_v9, %v1527_v25 }
 0x394   : > { %v1540_v27 = vmul.f32 1.442695, %v1535_v26 }
 0x395   : > { %v1530_v28 = vpop.xlane.xlu0 %1529  ;;  %v1063_v43 = vpop.permute.xlu1 %1062 }
 0x396   : > { %2652 = vpow2.f32 %v1540_v27  ;;  %v1536_v29 = vsub.f32 %v1520_v13, %v1530_v28 }
 0x398   : > { %v1542_v30 = vmul.f32 1.442695, %v1536_v29 }
 0x399   : > { %v1533_v31 = vpop.xlane.xlu0 %1532 }
 0x39a   : > { %2654 = vpow2.f32 %v1542_v30  ;;  %v1537_v32 = vsub.f32 %v1521_v17, %v1533_v31 }
 0x39c   : > { %v2651_v33 = vpop.eup %2650  ;;  %v1544_v34 = vmul.f32 1.442695, %v1537_v32 }
 0x39d   : > { %v1546_v35 = vsel %vm1207_vm2, %v2651_v33, 0.0 }
 0x39e   : > { %2656 = vpow2.f32 %v1544_v34  ;;  %1547 = vadd.xlane.f32.xlu1 %v1546_v35 }
 0x3a0   : > { %v2653_v36 = vpop.eup %2652 }
 0x3a1   : > { %v1549_v37 = vsel %vm1207_vm2, %v2653_v36, 0.0 }
 0x3a2   : > { %1550 = vadd.xlane.f32.xlu0 %v1549_v37  ;;  %v2020_v37 = vld [vmem:[#allocation10] sm:$0xff] }
 0x3a4   : > { %v2655_v38 = vpop.eup %2654 }
 0x3a5   : > { %v1552_v39 = vsel %vm1207_vm2, %v2655_v38, 0.0 }
 0x3a6   : > { %1553 = vadd.xlane.f32.xlu1 %v1552_v39 }
 0x3a8   : > { %v2657_v40 = vpop.eup %2656 }
 0x3a9   : > { %v1555_v42 = vsel %vm1207_vm2, %v2657_v40, 0.0 }
 0x3aa   : > { %1556 = vadd.xlane.f32.xlu0 %v1555_v42 }
 0x3b7   : > { %1068 = vrot.lane.b32.xlu1 %v766_v21, %s2946_s14  ;;  %s3464_s14 = scalar_lea.hbm %s3559_s9, %s2391_s15 }
 0x3c0   : > { %1065 = vrot.lane.b32.xlu0 %v766_v21, %s2948_s22  ;;  %s2812_s22 = scalar_lea.vmem %s3466_s17, 256 }
 0x3c1   : > { %p2813_p4 = scmp.ne.s32.totalorder %s3466_s17, %s2812_s22  ;;  %p2820_p6 = scmp.lt.s32.totalorder %s2818_s21, %s2812_s22 }
 0x3c3   : > { %p2814_p3 = pnand %p2813_p4, %p3617_p1  ;;  %p2821_p8 = por %p2820_p6, %p2819_p10 }
 0x3c5   : > { %p2815_p11 = pneg %p2814_p3 }
 0x3c7   : > { %p2822_p0 = pnand %p2821_p8, %p2815_p11 }
 0x42b   : > { %v1548_v44 = vpop.xlane.xlu1 %1547 }
 0x42c   : > { %2658 = vrcp.f32 %v1548_v44 }
 0x42f   : > { %v1551_v45 = vpop.xlane.xlu0 %1550 }
 0x430   : > { %2660 = vrcp.f32 %v1551_v45 }
 0x433   : > { %v1554_v46 = vpop.xlane.xlu1 %1553 }
 0x434   : > { %2662 = vrcp.f32 %v1554_v46 }
 0x436   : > { %v2659_v47 = vpop.eup %2658 }
 0x437   : > { %v1562_v49 = vmul.f32 %v2659_v47, %v2651_v33  ;;  %v1557_v50 = vpop.xlane.xlu0 %1556  ;;  %v1069_v51 = vpop.permute.xlu1 %1068 }
 0x438   : > { %2664 = vrcp.f32 %v1557_v50  ;;  %v1087_v54 = vcombine.low %v1063_v43, %v1069_v51  ;;  %v1088_v55 = vcombine.high %v1063_v43, %v1069_v51 }
 0x439   : > { %v1566_v52 = vpack.c.bf16 %v1562_v49, %v1562_v49 }
 0x43a   : > { %v2661_v53 = vpop.eup %2660  ;;  %v1095_v62 = vrot.slane %v1087_v54, %v3313_v41  ;;  %v1102_v63 = vrot.slane %v1088_v55, %v3313_v41 }
 0x43b   : > { %1571 = vst.msk [vmem:[%s3401_s18] sm:$0xf] %vm1570_vm5, %v1566_v52  ;;  %v1563_v56 = vmul.f32 %v2661_v53, %v2653_v36  ;;  %v1066_v57 = vpop.permute.xlu0 %1065 }
 0x43c   : > { %v1071_v58 = vcombine.low %v766_v21, %v1066_v57  ;;  %v1072_v59 = vcombine.high %v766_v21, %v1066_v57 }
 0x43d   : > { %v1567_v60 = vpack.c.bf16 %v1563_v56, %v1563_v56 }
 0x43e   : > { %v2663_v61 = vpop.eup %2662  ;;  %v1079_v2 = vrot.slane %v1071_v58, %v3313_v41  ;;  %v1086_v3 = vrot.slane %v1072_v59, %v3313_v41 }
 0x43f   : > { %1572 = vst.msk [vmem:[%s3401_s18 + $0x4] sm:$0xf] %vm1570_vm5, %v1567_v60  ;;  %v1564_v4 = vmul.f32 %v2663_v61, %v2655_v38  ;;  %v2021_v38 = vld [vmem:[#allocation10 + $0x8] sm:$0xff]  ;;  %v2022_v60 = vld [vmem:[#allocation10 + $0x10] sm:$0xff]  ;;  %v2023_v61 = vld [vmem:[#allocation10 + $0x18] sm:$0xff] }
 0x440   : > { %v1103_v5 = vcombine.low %v1079_v2, %v1095_v62  ;;  %v1104_v6 = vcombine.high %v1079_v2, %v1095_v62  ;;  %v1119_v7 = vcombine.low %v1086_v3, %v1102_v63  ;;  %v1120_v8 = vcombine.high %v1086_v3, %v1102_v63 }
 0x441   : > { %v1568_v9 = vpack.c.bf16 %v1564_v4, %v1564_v4  ;;  %v2531_v39 = vpack.c.bf16 %v2021_v38, %v2020_v37 }
 0x442   : > { %v2665_v10 = vpop.eup %2664  ;;  %v1111_v11 = vrot.slane %v1103_v5, %v3315_v48  ;;  %v1118_v12 = vrot.slane %v1104_v6, %v3315_v48  ;;  %v1127_v13 = vrot.slane %v1119_v7, %v3315_v48  ;;  %v1134_v14 = vrot.slane %v1120_v8, %v3315_v48 }
 0x443   : > { %1573 = vst.msk [vmem:[%s3401_s18 + $0x8] sm:$0xf] %vm1570_vm5, %v1568_v9  ;;  %v1565_v15 = vmul.f32 %v2665_v10, %v2657_v40 }
 0x444   : > { %v1139_v16 = vcombine.low %v1111_v11, %v1118_v12  ;;  %v2366_v17 = vcombine.high %v1111_v11, %v1118_v12  ;;  %v1155_v18 = vcombine.low %v1127_v13, %v1134_v14  ;;  %v2367_v19 = vcombine.high %v1127_v13, %v1134_v14 }
 0x445   : > { %v1569_v20 = vpack.c.bf16 %v1565_v15, %v1565_v15 }
 0x446   : > { %v1146_v21 = vrot.slane %v1139_v16, %v3313_v41  ;;  %v1154_v22 = vrot.slane %v2366_v17, %v3313_v41  ;;  %v1162_v23 = vrot.slane %v1155_v18, %v3313_v41  ;;  %v1170_v24 = vrot.slane %v2367_v19, %v3313_v41 }
 0x447   : > { %1574 = vst.msk [vmem:[%s3401_s18 + $0xc] sm:$0xf] %vm1570_vm5, %v1569_v20 }
 0x448   : > { %v1171_v25 = vcombine.low %v1146_v21, %v1154_v22  ;;  %v1187_v26 = vcombine.low %v1162_v23, %v1170_v24  ;;  %v1172_v27 = vcombine.high %v1146_v21, %v1154_v22  ;;  %v1188_v28 = vcombine.high %v1162_v23, %v1170_v24 }
 0x44a   : > { %v1179_v29 = vrot.slane %v1171_v25, %v3315_v48  ;;  %v1195_v30 = vrot.slane %v1187_v26, %v3315_v48  ;;  %v1186_v31 = vrot.slane %v1172_v27, %v3315_v48  ;;  %v1202_v32 = vrot.slane %v1188_v28, %v3315_v48 }
 0x44c   : > { %v1203_v33 = vcombine.low %v1179_v29, %v1195_v30  ;;  %v1204_v34 = vcombine.high %v1179_v29, %v1195_v30  ;;  %v1205_v35 = vcombine.low %v1186_v31, %v1202_v32  ;;  %v1206_v36 = vcombine.high %v1186_v31, %v1202_v32 }
 0x44e   : > { %2482 = vmatpush3.msra.mxu0 %v1203_v33  ;;  %2487 = vmatpush3.msra.mxu1 %v1204_v34 }
 0x44f   : > { %2484 = vmatmul.mubr.msk.f32.vlgmr.msra.gmra.mrb[4].mxu0 %vm1207_vm2, %v1562_v49  ;;  %2489 = vmatmul.mubr.msk.f32.vlgmr.msra.gmra.mrb[10].mxu1 %vm1207_vm2, %v1563_v56 }
 0x450   : > { %2491 = vmatprep.subr.mxu0 %v2945_v1  ;;  %2496 = vmatprep.subr.mxu1 %v2945_v1 }
 0x451   : > { %2492 = vmatpush3.msra.mxu0 %v1205_v35  ;;  %2497 = vmatpush3.msra.mxu1 %v1206_v36 }
 0x452   : > { %2493 = vmatprep.mubr.msk.f32.mxu0 %vm2944_vm0, %v2945_v1  ;;  %2498 = vmatprep.mubr.msk.f32.mxu1 %vm2944_vm0, %v2945_v1 }
 0x453   : > { %2494 = vmatmul.mubr.msk.f32.vlgmr.msra.gmra.mrb[6].mxu0 %vm1207_vm2, %v1564_v4  ;;  %2499 = vmatmul.mubr.msk.f32.vlgmr.msra.gmra.mrb[12].mxu1 %vm1207_vm2, %v1565_v15  ;;  %v2534_v4 = vpack.c.bf16 %v2023_v61, %v2022_v60 }
 0x454   : > { %2530 = vmatprep.subr.bf16.mxu0 %v2943_v0  ;;  %2509 = vmatprep.mubr.msk.f32.mxu0 %vm2944_vm0, %v2945_v1 }
 0x455   : > { %2532 = vmatpush3.bf16.msra.mxu0 %v2531_v39 }
 0x456   : > { %2533 = vmatprep.subr.bf16.mxu0 %v2943_v0 }
 0x459   : > { %2535 = vmatpush3.bf16.msra.mxu0 %v2534_v4 }
 0x522   : > { %v1644_v40 = vpop.f32.mrb[4].mxu0  ;;  %v1717_v42 = vpop.f32.mrb[10].mxu1 }
 0x523   : > { %v2485_v43 = vpop.f32.mrb[5].mxu0  ;;  %v2490_v44 = vpop.f32.mrb[11].mxu1 }
 0x526   : > { %v1790_v45 = vpop.f32.mrb[6].mxu0  ;;  %v1863_v46 = vpop.f32.mrb[12].mxu1 }
 0x527   : > { %v1867_v47 = vcombine.low %v1644_v40, %v1790_v45  ;;  %v1868_v49 = vcombine.high %v1644_v40, %v1790_v45  ;;  %v1883_v50 = vcombine.low %v1717_v42, %v1863_v46  ;;  %v1884_v51 = vcombine.high %v1717_v42, %v1863_v46  ;;  %v2495_v52 = vpop.f32.mrb[7].mxu0  ;;  %v2500_v53 = vpop.f32.mrb[13].mxu1 }
 0x529   : > { %v1875_v1 = vrot.slane %v1867_v47, %v3313_v41  ;;  %v1882_v54 = vrot.slane %v1868_v49, %v3313_v41  ;;  %v1891_v55 = vrot.slane %v1883_v50, %v3313_v41  ;;  %v1898_v0 = vrot.slane %v1884_v51, %v3313_v41 }
 0x52b   : > { %v1899_v56 = vcombine.low %v1875_v1, %v1891_v55  ;;  %v1900_v57 = vcombine.high %v1875_v1, %v1891_v55  ;;  %v1915_v58 = vcombine.low %v1882_v54, %v1898_v0  ;;  %v1916_v59 = vcombine.high %v1882_v54, %v1898_v0 }
 0x52d   : > { %v1907_v62 = vrot.slane %v1899_v56, %v3315_v48  ;;  %v1914_v63 = vrot.slane %v1900_v57, %v3315_v48  ;;  %v1923_v2 = vrot.slane %v1915_v58, %v3315_v48  ;;  %v1930_v3 = vrot.slane %v1916_v59, %v3315_v48 }
 0x52f   : > { %v1935_v5 = vcombine.low %v1907_v62, %v1914_v63  ;;  %v2380_v6 = vcombine.high %v1907_v62, %v1914_v63  ;;  %v1951_v7 = vcombine.low %v1923_v2, %v1930_v3  ;;  %v2381_v8 = vcombine.high %v1923_v2, %v1930_v3 }
 0x531   : > { %v1942_v9 = vrot.slane %v1935_v5, %v3313_v41  ;;  %v1950_v10 = vrot.slane %v2380_v6, %v3313_v41  ;;  %v1958_v11 = vrot.slane %v1951_v7, %v3313_v41  ;;  %v1966_v12 = vrot.slane %v2381_v8, %v3313_v41 }
 0x533   : > { %v1968_v13 = vcombine.high %v1942_v9, %v1950_v10  ;;  %v1984_v14 = vcombine.high %v1958_v11, %v1966_v12  ;;  %v1967_v15 = vcombine.low %v1942_v9, %v1950_v10  ;;  %v1983_v16 = vcombine.low %v1958_v11, %v1966_v12 }
 0x535   : > { %v1982_v17 = vrot.slane %v1968_v13, %v3315_v48  ;;  %v1998_v18 = vrot.slane %v1984_v14, %v3315_v48  ;;  %v1975_v19 = vrot.slane %v1967_v15, %v3315_v48  ;;  %v1991_v20 = vrot.slane %v1983_v16, %v3315_v48 }
 0x537   : > { %v2001_v21 = vcombine.low %v1982_v17, %v1998_v18  ;;  %v2000_v22 = vcombine.high %v1975_v19, %v1991_v20  ;;  %v2002_v23 = vcombine.high %v1982_v17, %v1998_v18  ;;  %v1999_v24 = vcombine.low %v1975_v19, %v1991_v20 }
 0x539   : > { %2008 = vrot.lane.b32.xlu0 %v2001_v21, %s2952_s19  ;;  %2004 = vrot.lane.b32.xlu1 %v2000_v22, %s2953_s24 }
 0x53d   : > { %2012 = vrot.lane.b32.xlu1 %v2002_v23, %s2954_s8 }
 0x5ab   : > { %v2005_v41 = vpop.permute.xlu1 %2004  ;;  %v2009_v25 = vpop.permute.xlu0 %2008 }
 0x5ac   : > { %v2015_v26 = vsel %vm1207_vm2, %v1999_v24, %v2005_v41 }
 0x5ad   : > { %v2017_v27 = vsel %vm2016_vm6, %v2015_v26, %v2009_v25 }
 0x5af   : > { %v2013_v48 = vpop.permute.xlu1 %2012 }
 0x5b0   : > { %v2019_v28 = vsel %vm2018_vm7, %v2017_v27, %v2013_v48 }
 0x5b1   : > { %2510 = vmatmul.mubr.msk.f32.vlgmr.msra.gmra.mrb[8].mxu0 %vm523_vm1, %v2019_v28 }
 0x5b2   : > { %2825 = shalt.err (!%p2822_p0)
}
 0x5b3   : > { %s2826_s23 = scalar_lea.hbm %s3464_s14, 256  ;;  %s2830_s6 = scalar_lea.hbm %s3559_s9, 512 }
 0x5b4   : > { %p2827_p5 = scmp.ne.s32.totalorder %s3464_s14, %s2826_s23  ;;  %p2831_p13 = scmp.lt.u32.totalorder %s3464_s14, %s3559_s9 }
 0x5b5   : > { %p2832_p9 = scmp.lt.u32.totalorder %s2830_s6, %s2826_s23  ;;  %p2834_p4 = scmp.lt.u32.totalorder %s2826_s23, %s3464_s14 }
 0x5b6   : > { %p2828_p12 = pnand %p2827_p5, %p3617_p1 }
 0x5b7   : > { %p2833_p2 = por %p2832_p9, %p2831_p13 }
 0x5b8   : > { %p2829_p7 = pneg %p2828_p12 }
 0x5b9   : > { %p2835_p3 = por %p2834_p4, %p2833_p2 }
 0x5bb   : > { %p2836_p11 = pnand %p2835_p3, %p2829_p7 }
 0x5bd   : > { %2839 = shalt.err (!%p2836_p11)
}
 0x5be   : > { %s2956_s19 = smov 64   ;;  %s2957_s24 = smov 4   ;;  %v2382_v29 = vld [vmem:[%s3557_s7] ss:$0 sm:$0xff] }
 0x5bf   : > { %2551 = dma.vmem_to_hbm [thread:$0]  (%p3617_p1), %s3466_s17, 256, %s3464_s14, %s2111_s28, %s2956_s19, %s2956_s19, %s2957_s24  }
 0x5c0   : > { %s2386_s1 = sshll.u32 %s2926_s12, 7  ;;  %s491_s16 = scalar_lea.vmem [#allocation11], %s3257_s13 }
 0x5c1   : > { %s2125_s22 = sshll.u32 %s491_s16, 4  ;;  %s3618_s21 = sld [smem:[#allocation28_spill]]  ;;  %s3502_s22 = int_to_ptr.vmem [resolvable:$true] %s2125_s22 }
 0x5c2   : > { %s2106_s17 = scalar_lea.sflag [#allocation4], %s3254_s4  ;;  %s2840_s14 = scalar_lea.vmem %s3502_s22, 128 }
 0x5c3   : > { %p2841_p10 = scmp.ne.s32.totalorder %s3502_s22, %s2840_s14  ;;  %s2958_s12 = smov [#allocation11]  }
 0x5c4   : > { %s2844_s13 = sshll.u32 %s2958_s12, 4  ;;  %s2845_s13 = int_to_ptr.vmem [resolvable:$false] %s2844_s13 }
 0x5c5   : > { %p2842_p6 = pnand %p2841_p10, %p3617_p1  ;;  %s2846_s28 = scalar_lea.vmem %s2845_s13, 256 }
 0x5c6   : > { %p2847_p0 = scmp.lt.s32.totalorder %s3502_s22, %s2845_s13  ;;  %p2848_p5 = scmp.lt.s32.totalorder %s2846_s28, %s2840_s14 }
 0x5c7   : > { %s3500_s23 = scalar_lea.hbm %s3618_s21, %s2386_s1  ;;  %p2843_p8 = pneg %p2842_p6 }
 0x5c8   : > { %p2849_p12 = por %p2848_p5, %p2847_p0 }
 0x5ca   : > { %p2850_p7 = pnand %p2849_p12, %p2843_p8 }
 0x684   : > { %v2100_v30 = vpop.f32.mrb[8].mxu0 }
 0x685   : > { %v2101_v31 = vadd.f32 %v2382_v29, %v2100_v30  ;;  %v2511_v32 = vpop.f32.mrb[9].mxu0 }
 0x687   : > { %2104 = vst.msk [vmem:[%s491_s16] sm:$0xff] %vm523_vm1, %v2101_v31 }
 0x688   : > { %2853 = shalt.err (!%p2850_p7)
}
 0x689   : > { %s2854_s4 = scalar_lea.hbm %s3500_s23, 128  ;;  %s2858_s6 = scalar_lea.hbm %s3618_s21, 256 }
 0x68a   : > { %p2855_p13 = scmp.ne.s32.totalorder %s3500_s23, %s2854_s4  ;;  %p2859_p4 = scmp.lt.u32.totalorder %s3500_s23, %s3618_s21 }
 0x68b   : > { %p2860_p3 = scmp.lt.u32.totalorder %s2858_s6, %s2854_s4  ;;  %p2862_p10 = scmp.lt.u32.totalorder %s2854_s4, %s3500_s23 }
 0x68c   : > { %p2856_p9 = pnand %p2855_p13, %p3617_p1 }
 0x68d   : > { %p2861_p11 = por %p2860_p3, %p2859_p4 }
 0x68e   : > { %p2857_p2 = pneg %p2856_p9 }
 0x68f   : > { %p2863_p6 = por %p2862_p10, %p2861_p11 }
 0x691   : > { %p2864_p8 = pnand %p2863_p6, %p2857_p2 }
 0x693   : > { %2867 = shalt.err (!%p2864_p8)
}
 0x694   : > { %2550 = dma.vmem_to_hbm [thread:$0]  (%p3617_p1), %s3502_s22, 128, %s3500_s23, %s2106_s17  }
 0x695 PF: > { %s3619_s19 = sld [smem:[#allocation19_spill]]  ;;  %s3620_s24 = sld [smem:[#allocation22_spill]] }
 0x696   : > { %s3621_s8 = sld [smem:[#allocation21_spill]] }
 0x69b   : > { %s2154_s15 = sand.u32 1, %s3619_s19   ;;  %p3622_p0 = scmp.ne.s32.totalorder %s3620_s24, 0 }
 0x69c   : > { %p3623_p5 = scmp.ge.s32.totalorder %s3621_s8, 2  ;;  %s2155_s1 = scalar_lea.sflag [#allocation4], %s2154_s15 }
 0x69e   : > { %p2572_p12 = pnand %p3623_p5, %p3622_p0 }
 0x6a0   : > { %2905 = dma.done.wait (!%p2572_p12), %s2155_s1, 128  }
 0x6a1   : > { %2907 = vsyncadd (!%p2572_p12), %s2155_s1, 4294967168  ;;  %s2164_s16 = scalar_lea.sflag [#allocation13], %s2154_s15 }
 0x6a2   : > { %2909 = dma.done.wait (!%p2572_p12), %s2164_s16, 256  }
 0x6a3   : > { %2911 = vsyncadd (!%p2572_p12), %s2164_s16, 4294967040  ;;  %s33_s14 = sadd.s32 1, %s3621_s8   ;;  %s3624_s29 = sld [smem:[#allocation24_spill]] }
 0x6a4   : > { %p30_p7 = scmp.ge.s32.totalorder %s33_s14, 4   ;;  %s3625_s12 = sld [smem:[#allocation20_spill]] }
 0x6a5   : > { %s3626_s13 = sld [smem:[#allocation23_spill]]  ;;  %s3627_s30 = smov %s2918_s10 }
 0x6a6   : > { %s3628_s10 = smov %s2922_s11  ;;  %32 = sbr.rel (!%p30_p7) target bundleno = 16 (0x10), region = 153 }
 0x6a9   : > { %s3629_s11 = smov %s3624_s29 }
 0x6ad   :  { %2169 = vsyncpa [#allocation3], 1 }
 0x6ae   :  { %2171 = vsyncpa [#allocation3 + $0x1], 1 }
 0x6af   :  { %2172 = vsyncpa [#allocation6], 1 }
 0x6b0   :  { %2174 = vsyncpa [#allocation6 + $0x1], 1 }
 0x6b1   :  { %2175 = vsyncpa [#allocation9], 1 }
 0x6b2   :  { %2176 = vsyncpa [#allocation4], 1 }
 0x6b3   :  { %2178 = vsyncpa [#allocation4 + $0x1], 1 }
 0x6b4   :  { %2179 = vsyncpa [#allocation13], 1 }
 0x6b5   :  { %2181 = vsyncpa [#allocation13 + $0x1], 1 }

</bundles_post_ra>
